<compile_context>
chip_gen: v6e
topology: v6e:2x2x1
jax: 0.10.0
libtpu: 0.0.40
codegen_flags: <defaults>
</compile_context>

<pallas_src>
import functools

import jax
import jax.numpy as jnp
from jax import lax
from jax.experimental import pallas as pl
from jax.experimental.pallas import tpu as pltpu

LIF_DECAY = 0.9
LIF_VTH = 1.0


# ---------------------------------------------------------------------------
# Kernel
# ---------------------------------------------------------------------------
def continuous_snn_kernel(x_ref, wenc_ref, benc_ref,
                          w1_ref, b1_ref, w2_ref, b2_ref,
                          wout_ref, bout_ref,
                          out_ref, *refs, return_v: bool):
    """One (N-block, T-block) grid step.

    x_ref     : [Tt, Nt, xdim]     bf16 input spikes (time-major)
    w*_ref    : bf16 weights; b*_ref : f32 biases (constant blocks -> resident)
    out_ref   : [Tt, Nt, out_size] f32 head output tile
    v_out_ref : [Tt, Nt, in_size]  f32 membrane potentials (only when return_v)
    stage_ref : [Tt, Nt, in_size]  f32 VMEM stage for currents / potentials
    carry_ref : [Nt, in_size]      f32 LIF state carried across T-blocks
    """
    if return_v:
        v_out_ref, stage_ref, carry_ref = refs
    else:
        stage_ref, carry_ref = refs
        v_out_ref = None

    Tt, Nt, xdim = x_ref.shape
    in_size = wenc_ref.shape[1]
    out_size = wout_ref.shape[1]
    rows = Tt * Nt

    # T is the innermost ("arbitrary") axis: reset the carried LIF state at the
    # first T-block of every N-block.
    @pl.when(pl.program_id(1) == 0)
    def _():
        carry_ref[...] = jnp.zeros_like(carry_ref)

    # ---- encoder matmul hoisted out of the recurrence: one bf16 MXU call ----
    if Nt % 16 == 0:
        # layout-preserving reshape on the packed bf16 tile
        x_flat = x_ref[...].reshape(rows, xdim)
    else:
        # small-Nt fallback: relayout in f32 (proven path), downcast for the MXU
        x_flat = x_ref[...].astype(jnp.float32).reshape(rows, xdim).astype(jnp.bfloat16)
    cur = jnp.dot(x_flat, wenc_ref[...],
                  preferred_element_type=jnp.float32) + benc_ref[...]
    # Stage the per-step input currents; the recurrence overwrites them with v.
    stage_ref[...] = cur.reshape(Tt, Nt, in_size)

    # ---- LIF recurrence over the T-block: serial, pure VPU elementwise -------
    # Spike state is derived from v (s = v >= vth, v0 = 0 -> s0 = 0); the
    # reset-by-gating decay*v*(1-s) folds into a single select.
    def lif_step(t, v):
        v_new = jnp.where(v >= LIF_VTH, 0.0, LIF_DECAY * v) + stage_ref[t]
        stage_ref[t] = v_new
        return v_new

    carry_ref[...] = lax.fori_loop(0, Tt, lif_step, carry_ref[...], unroll=8)

    # ---- head: Conv1d(k=1) stack == dense over channels; bf16 MXU, f32 acc ---
    if v_out_ref is not None:
        v_out_ref[...] = stage_ref[...]                  # one bulk writeback / block
    v_flat = stage_ref[...].reshape(rows, in_size)       # f32 potentials
    h = jnp.dot(v_flat.astype(jnp.bfloat16), w1_ref[...],
                preferred_element_type=jnp.float32) + b1_ref[...]
    h = jnp.maximum(h, 0.0)
    h = jnp.dot(h.astype(jnp.bfloat16), w2_ref[...],
                preferred_element_type=jnp.float32) + b2_ref[...]
    h = jnp.maximum(h, 0.0)
    o = jnp.dot(h.astype(jnp.bfloat16), wout_ref[...],
                preferred_element_type=jnp.float32) + bout_ref[...]
    # out-actf = identity; Dropout = identity in eval.
    out_ref[...] = o.reshape(Tt, Nt, out_size)


# ---------------------------------------------------------------------------
# Sizing helpers (generation-aware)
# ---------------------------------------------------------------------------
def _round_up(x, m):
    return (x + m - 1) // m * m


def _tpu_budget():
    """Best-effort VMEM capacity / TensorCore count; conservative fallbacks."""
    vmem_bytes = 64 * 1024 * 1024          # v7x physical VMEM (smallest of the 3)
    num_cores = 1
    try:
        info = pltpu.get_tpu_info()
        for name in ("vmem_capacity_bytes", "vmem_bytes", "vmem_size_bytes"):
            v = getattr(info, name, None)
            if v:
                vmem_bytes = int(v)
                break
        for name in ("num_tensorcores", "tensorcores_per_chip",
                     "num_cores", "cores_per_chip"):
            c = getattr(info, name, None)
            if c:
                num_cores = int(c)
                break
    except Exception:
        pass
    return vmem_bytes, num_cores


def _nt_ok(nt, n):
    # (8,128) rule on the 3-D blocks: second-minor dim Nt must be a multiple of
    # 8 or equal to the full batch dim.
    return 0 < nt <= n and n % nt == 0 and (nt == n or nt % 8 == 0)


def _block_vmem_bytes(tt, nt, xdim, in_size, out_size, return_v):
    """Rough per-block VMEM footprint including (8,128)/(16,128) tile padding."""
    x_buf = tt * _round_up(nt, 16) * _round_up(xdim, 128) * 2 * 2   # bf16, dbl buf
    stage = tt * _round_up(nt, 8) * _round_up(in_size, 128) * 4     # f32 scratch
    out_buf = tt * _round_up(nt, 8) * _round_up(out_size, 128) * 4 * 2
    v_buf = tt * _round_up(nt, 8) * _round_up(in_size, 128) * 4 * 2 if return_v else 0
    carry = _round_up(nt, 8) * _round_up(in_size, 128) * 4
    return x_buf + stage + out_buf + v_buf + carry + (1 << 20)      # +1 MiB misc


def _pick_time_block(T, cap, fits):
    cands = [d for d in range(min(T, max(cap, 1)), 0, -1) if T % d == 0]
    for d in cands:
        if fits(d):
            return d
    return cands[-1]


# ---------------------------------------------------------------------------
# Wrapper
# ---------------------------------------------------------------------------
def continuous_snn_forward(inspikes, params, return_v=False,
                           t_block=None, n_block=None):
    """inspikes: [N, T, xdim] (same layout as the PyTorch forward).

    Returns out [N, T, out_size] (and out_v [N, T, in_size] when return_v).
    """
    N, T, xdim = inspikes.shape
    in_size = params["wenc"].shape[1]
    h1 = params["w1"].shape[1]
    h2 = params["w2"].shape[1]
    out_size = params["wout"].shape[1]

    # Time-major + bf16: binary spikes are exact in bf16, and the transpose
    # fuses with the cast into a single XLA copy pass (halves the x HBM bytes).
    # TODO(synk): if ContinuousSNN is ever fed non-binary inputs the bf16 cast
    # becomes a (small) precision change; gate on dtype/range in that case.
    x_tnd = jnp.transpose(inspikes, (1, 0, 2)).astype(jnp.bfloat16)

    # bf16 MXU operands; biases stay f32 and are added after the f32 accumulate.
    wenc = params["wenc"].astype(jnp.bfloat16)
    w1 = params["w1"].astype(jnp.bfloat16)
    w2 = params["w2"].astype(jnp.bfloat16)
    wout = params["wout"].astype(jnp.bfloat16)

    vmem_cap, num_cores = _tpu_budget()
    # scoped VMEM limit ~3/4 of physical: ~96 MiB on v5e/v6e, ~48 MiB on v7x
    vmem_limit = int(min(max(vmem_cap * 3 // 4, 32 * 1024 * 1024),
                         100 * 1024 * 1024))
    budget = vmem_limit // 2          # headroom for weights / compiler scratch

    # Batch tiling: one block on single-TC chips (extra grid steps are a serial
    # loop there); split in two on multi-TC chips so the "parallel" axis
    # engages the second TensorCore.
    if n_block is not None:
        if not _nt_ok(n_block, N):
            raise ValueError(f"invalid n_block={n_block} for N={N}")
        nt = n_block
    elif num_cores >= 2 and _nt_ok(N // 2, N):
        nt = N // 2
    else:
        nt = N

    cap = t_block if t_block is not None else T
    tt = _pick_time_block(
        T, cap,
        lambda d: _block_vmem_bytes(d, nt, xdim, in_size, out_size, return_v)
        <= budget)
    grid = (N // nt, T // tt)

    def wspec(p):
        return pl.BlockSpec(p.shape, lambda nb, tb: (0,) * p.ndim)

    in_specs = [pl.BlockSpec((tt, nt, xdim), lambda nb, tb: (tb, nb, 0))] + \
               [wspec(p) for p in (wenc, params["benc"], w1, params["b1"],
                                   w2, params["b2"], wout, params["bout"])]

    out_shape = [jax.ShapeDtypeStruct((T, N, out_size), jnp.float32)]
    out_specs = [pl.BlockSpec((tt, nt, out_size), lambda nb, tb: (tb, nb, 0))]
    if return_v:
        out_shape.append(jax.ShapeDtypeStruct((T, N, in_size), jnp.float32))
        out_specs.append(pl.BlockSpec((tt, nt, in_size), lambda nb, tb: (tb, nb, 0)))

    scratch = [pltpu.VMEM((tt, nt, in_size), jnp.float32),   # currents / potentials
               pltpu.VMEM((nt, in_size), jnp.float32)]       # LIF carry

    flops = 2 * T * N * (xdim * in_size + in_size * h1 + h1 * h2 + h2 * out_size)
    param_bytes = sum(int(p.size) * p.dtype.itemsize for p in
                      (wenc, params["benc"], w1, params["b1"],
                       w2, params["b2"], wout, params["bout"]))
    bytes_accessed = (int(x_tnd.size) * 2 + T * N * out_size * 4 + param_bytes
                      + (T * N * in_size * 4 if return_v else 0))
    cost = pl.CostEstimate(flops=int(flops), transcendentals=0,
                           bytes_accessed=int(bytes_accessed))

    outs = pl.pallas_call(
        functools.partial(continuous_snn_kernel, return_v=return_v),
        out_shape=tuple(out_shape),
        grid_spec=pltpu.PrefetchScalarGridSpec(
            num_scalar_prefetch=0,
            grid=grid,
            in_specs=in_specs,
            out_specs=tuple(out_specs),
            scratch_shapes=scratch),
        compiler_params=pltpu.CompilerParams(
            # batch blocks may shard across TensorCores; the T axis carries the
            # LIF recurrence and must stay sequential.
            dimension_semantics=("parallel", "arbitrary"),
            vmem_limit_bytes=vmem_limit),
        cost_estimate=cost,
    )(x_tnd, wenc, params["benc"], w1, params["b1"],
      w2, params["b2"], wout, params["bout"])

    out = jnp.transpose(outs[0], (1, 0, 2))                  # [N, T, out_size]
    if return_v:
        return out, jnp.transpose(outs[1], (1, 0, 2))        # [N, T, in_size]
    return out


# ---------------------------------------------------------------------------
# Pure-JAX f32 reference (original (v, s)-carry form) + params
# ---------------------------------------------------------------------------
def reference_forward(inspikes, params):
    x = jnp.transpose(inspikes, (1, 0, 2)).astype(jnp.float32)   # [T, N, xdim]
    T, N, _ = x.shape
    in_size = params["wenc"].shape[1]

    def step(carry, x_t):
        v, s = carry
        cur = x_t @ params["wenc"] + params["benc"]
        v_new = LIF_DECAY * v * (1.0 - s) + cur
        s_new = (v_new >= LIF_VTH).astype(jnp.float32)
        return (v_new, s_new), v_new

    init = (jnp.zeros((N, in_size), jnp.float32),
            jnp.zeros((N, in_size), jnp.float32))
    _, out_v = lax.scan(step, init, x)                           # [T, N, in_size]

    h = jnp.maximum(out_v @ params["w1"] + params["b1"], 0.0)
    h = jnp.maximum(h @ params["w2"] + params["b2"], 0.0)
    o = h @ params["wout"] + params["bout"]
    return jnp.transpose(o, (1, 0, 2)), jnp.transpose(out_v, (1, 0, 2))


def make_params(key, xdim, in_size, hiddens, out_size):
    ks = jax.random.split(key, 4)
    h1, h2 = hiddens

    def w(k, shape, fan_in):
        v = jax.random.normal(k, shape, jnp.float32) / jnp.sqrt(fan_in)
        # bf16-representable values -> the kernel's bf16 weights are a lossless
        # cast of the reference's f32 weights (no threshold-flip risk in LIF).
        return v.astype(jnp.bfloat16).astype(jnp.float32)

    return {
        # encoder weight stored pre-transposed: [xdim, in_size]
        "wenc": w(ks[0], (xdim, in_size), xdim),
        "benc": 0.01 * jnp.ones((1, in_size), jnp.float32),
        # head Conv1d(k=1) weights stored pre-transposed: [c_in, c_out]
        "w1": w(ks[1], (in_size, h1), in_size),
        "b1": 0.02 * jnp.ones((1, h1), jnp.float32),
        "w2": w(ks[2], (h1, h2), h1),
        "b2": 0.03 * jnp.ones((1, h2), jnp.float32),
        "wout": w(ks[3], (h2, out_size), h2),
        "bout": 0.04 * jnp.ones((1, out_size), jnp.float32),
    }


if __name__ == "__main__":
    # config: in-size=32, hiddens=[32, 32], out-size=4, out-actf=identity,
    # dropout(eval)=identity.
    XDIM, IN_SIZE, HIDDENS, OUT_SIZE = 16, 32, [32, 32], 4

    key = jax.random.PRNGKey(0)
    k_x, k_p, k_x2 = jax.random.split(key, 3)
    params = make_params(k_p, XDIM, IN_SIZE, HIDDENS, OUT_SIZE)

    # --- case 1: tiny batch (Nt == N), T split in two blocks to exercise the
    #     cross-T-block LIF carry; return_v=True and return_v=False paths.
    N, T = 2, 16
    inspikes = (jax.random.uniform(k_x, (N, T, XDIM)) < 0.3).astype(jnp.float32)
    out, out_v = continuous_snn_forward(inspikes, params, return_v=True, t_block=8)
    out = jax.block_until_ready(out)
    out_v = jax.block_until_ready(out_v)
    assert out.shape == (N, T, OUT_SIZE), out.shape
    assert out_v.shape == (N, T, IN_SIZE), out_v.shape

    out2 = jax.block_until_ready(
        continuous_snn_forward(inspikes, params, return_v=False, t_block=8))
    assert out2.shape == (N, T, OUT_SIZE), out2.shape

    ref_out, ref_v = reference_forward(inspikes, params)
    ref_out = jax.block_until_ready(ref_out)
    ref_v = jax.block_until_ready(ref_v)
    # encoder/LIF path: bf16-representable weights + f32 accumulation -> the
    # membrane potentials match the f32 reference tightly.
    if not jnp.allclose(out_v, ref_v, rtol=1e-4, atol=1e-4):
        raise AssertionError("membrane potentials do not match reference")
    # head rounds activations to bf16 for the fast MXU path (deliberate
    # precision trade) -> looser tolerance on the final output.
    if not jnp.allclose(out, ref_out, rtol=5e-2, atol=5e-2):
        raise AssertionError("head output does not match reference")
    if not jnp.allclose(out, out2, rtol=1e-6, atol=1e-6):
        raise AssertionError("return_v=False path disagrees with return_v=True")

    # --- case 2: multi-block batch (Nt=32 < N) -> grid (2, 2): exercises the
    #     "parallel" N axis, the per-N-block carry reset and layout-preserving
    #     bf16 reshapes (Nt % 16 == 0).
    N2, T2 = 64, 16
    inspikes2 = (jax.random.uniform(k_x2, (N2, T2, XDIM)) < 0.3).astype(jnp.float32)
    out_b, v_b = continuous_snn_forward(inspikes2, params, return_v=True,
                                        t_block=8, n_block=32)
    out_b = jax.block_until_ready(out_b)
    v_b = jax.block_until_ready(v_b)
    ref_out_b, ref_v_b = reference_forward(inspikes2, params)
    if not jnp.allclose(v_b, ref_v_b, rtol=1e-4, atol=1e-4):
        raise AssertionError("multi-block membrane potentials do not match reference")
    if not jnp.allclose(out_b, ref_out_b, rtol=5e-2, atol=5e-2):
        raise AssertionError("multi-block head output does not match reference")

    print("KERNEL_OK")
</pallas_src>

<mosaic_0001>
module attributes {stable_mosaic.version = 11 : i64} {
  func.func @continuous_snn_kernel(%arg0: i32, %arg1: i32, %arg2: memref<8x2x16xbf16, #tpu.memory_space<vmem>>, %arg3: memref<16x32xbf16, #tpu.memory_space<vmem>>, %arg4: memref<1x32xf32, #tpu.memory_space<vmem>>, %arg5: memref<32x32xbf16, #tpu.memory_space<vmem>>, %arg6: memref<1x32xf32, #tpu.memory_space<vmem>>, %arg7: memref<32x32xbf16, #tpu.memory_space<vmem>>, %arg8: memref<1x32xf32, #tpu.memory_space<vmem>>, %arg9: memref<32x4xbf16, #tpu.memory_space<vmem>>, %arg10: memref<1x4xf32, #tpu.memory_space<vmem>>, %arg11: memref<8x2x4xf32, #tpu.memory_space<vmem>>, %arg12: memref<8x2x32xf32, #tpu.memory_space<vmem>>, %arg13: memref<8x2x32xf32, #tpu.memory_space<vmem>>, %arg14: memref<2x32xf32, #tpu.memory_space<vmem>>) attributes {dimension_semantics = [#tpu.dimension_semantics<parallel>, #tpu.dimension_semantics<arbitrary>], iteration_bounds = array<i64: 1, 2>, scalar_prefetch = 0 : i64, scratch_operands = 2 : i64, tpu.core_type = #tpu.core_type<tc>, window_params = [{transform_indices = @transform_0, window_bounds = array<i64: 8, 2, 16>}, {pipeline_mode = #tpu.pipeline_mode<synchronous>, transform_indices = @transform_1, window_bounds = array<i64: 16, 32>}, {pipeline_mode = #tpu.pipeline_mode<synchronous>, transform_indices = @transform_2, window_bounds = array<i64: 1, 32>}, {pipeline_mode = #tpu.pipeline_mode<synchronous>, transform_indices = @transform_3, window_bounds = array<i64: 32, 32>}, {pipeline_mode = #tpu.pipeline_mode<synchronous>, transform_indices = @transform_4, window_bounds = array<i64: 1, 32>}, {pipeline_mode = #tpu.pipeline_mode<synchronous>, transform_indices = @transform_5, window_bounds = array<i64: 32, 32>}, {pipeline_mode = #tpu.pipeline_mode<synchronous>, transform_indices = @transform_6, window_bounds = array<i64: 1, 32>}, {pipeline_mode = #tpu.pipeline_mode<synchronous>, transform_indices = @transform_7, window_bounds = array<i64: 32, 4>}, {pipeline_mode = #tpu.pipeline_mode<synchronous>, transform_indices = @transform_8, window_bounds = array<i64: 1, 4>}, {transform_indices = @transform_9, window_bounds = array<i64: 8, 2, 4>}, {transform_indices = @transform_10, window_bounds = array<i64: 8, 2, 32>}]} {
    %c0_i32 = arith.constant 0 : i32
    %0 = arith.cmpi eq, %arg1, %c0_i32 : i32
    %1 = arith.extui %0 : i1 to i32
    %c0_i32_0 = arith.constant 0 : i32
    %2 = arith.cmpi ne, %1, %c0_i32_0 : i32
    scf.if %2 {
      %cst_100 = arith.constant 0.000000e+00 : f32
      %156 = vector.broadcast %cst_100 : f32 to vector<2x32xf32>
      %c0_101 = arith.constant 0 : index
      %c0_102 = arith.constant 0 : index
      %157 = vector.load %arg14[%c0_101, %c0_102] : memref<2x32xf32, #tpu.memory_space<vmem>>, vector<2x32xf32>
      tpu.vector_store %arg14[%c0_101, %c0_102], %156 {strides = array<i32>} : memref<2x32xf32, #tpu.memory_space<vmem>>, vector<2x32xf32>,
    } else {
    }
    %c0 = arith.constant 0 : index
    %c0_1 = arith.constant 0 : index
    %c0_2 = arith.constant 0 : index
    %3 = vector.load %arg2[%c0, %c0_1, %c0_2] : memref<8x2x16xbf16, #tpu.memory_space<vmem>>, vector<8x2x16xbf16>
    %4 = arith.extf %3 : vector<8x2x16xbf16> to vector<8x2x16xf32>
    %5 = vector.shape_cast %4 : vector<8x2x16xf32> to vector<16x16xf32>
    %6 = arith.truncf %5 : vector<16x16xf32> to vector<16x16xbf16>
    %c0_3 = arith.constant 0 : index
    %c0_4 = arith.constant 0 : index
    %7 = vector.load %arg3[%c0_3, %c0_4] : memref<16x32xbf16, #tpu.memory_space<vmem>>, vector<16x32xbf16>
    %cst = arith.constant dense<0.000000e+00> : vector<16x32xf32>
    %8 = tpu.matmul %6, %7, %cst {dimension_numbers = #tpu.dot_dimension_numbers<[1], [0], [0], [1], [0, 0, 1, 1], [], []>} : vector<16x16xbf16>, vector<16x32xbf16>, vector<16x32xf32> -> vector<16x32xf32>
    %c0_5 = arith.constant 0 : index
    %c0_6 = arith.constant 0 : index
    %9 = vector.load %arg4[%c0_5, %c0_6] : memref<1x32xf32, #tpu.memory_space<vmem>>, vector<1x32xf32>
    %10 = vector.broadcast %9 : vector<1x32xf32> to vector<16x32xf32>
    %11 = arith.addf %8, %10 : vector<16x32xf32>
    %12 = vector.shape_cast %11 : vector<16x32xf32> to vector<8x2x32xf32>
    %c0_7 = arith.constant 0 : index
    %c0_8 = arith.constant 0 : index
    %c0_9 = arith.constant 0 : index
    %13 = vector.load %arg13[%c0_7, %c0_8, %c0_9] : memref<8x2x32xf32, #tpu.memory_space<vmem>>, vector<8x2x32xf32>
    tpu.vector_store %arg13[%c0_7, %c0_8, %c0_9], %12 {strides = array<i32>} : memref<8x2x32xf32, #tpu.memory_space<vmem>>, vector<8x2x32xf32>,
    %c0_10 = arith.constant 0 : index
    %c0_11 = arith.constant 0 : index
    %14 = vector.load %arg14[%c0_10, %c0_11] : memref<2x32xf32, #tpu.memory_space<vmem>>, vector<2x32xf32>
    %c0_i32_12 = arith.constant 0 : i32
    %cst_13 = arith.constant 1.000000e+00 : f32
    %15 = vector.broadcast %cst_13 : f32 to vector<2x32xf32>
    %16 = arith.cmpf oge, %14, %15 : vector<2x32xf32>
    %cst_14 = arith.constant 0.899999976 : f32
    %17 = vector.broadcast %cst_14 : f32 to vector<2x32xf32>
    %18 = arith.mulf %17, %14 : vector<2x32xf32>
    %cst_15 = arith.constant 0.000000e+00 : f32
    %19 = vector.broadcast %cst_15 : f32 to vector<2x32xf32>
    %20 = arith.select %16, %19, %18 : vector<2x32xi1>, vector<2x32xf32>
    %21 = arith.index_cast %c0_i32_12 : i32 to index
    %c0_16 = arith.constant 0 : index
    %c0_17 = arith.constant 0 : index
    %22 = vector.load %arg13[%21, %c0_16, %c0_17] : memref<8x2x32xf32, #tpu.memory_space<vmem>>, vector<1x2x32xf32>
    %23 = vector.shape_cast %22 : vector<1x2x32xf32> to vector<2x32xf32>
    %24 = arith.addf %20, %23 : vector<2x32xf32>
    %25 = arith.index_cast %c0_i32_12 : i32 to index
    %c0_18 = arith.constant 0 : index
    %c0_19 = arith.constant 0 : index
    %26 = vector.load %arg13[%25, %c0_18, %c0_19] : memref<8x2x32xf32, #tpu.memory_space<vmem>>, vector<1x2x32xf32>
    %27 = vector.shape_cast %26 : vector<1x2x32xf32> to vector<2x32xf32>
    %28 = vector.shape_cast %24 : vector<2x32xf32> to vector<1x2x32xf32>
    tpu.vector_store %arg13[%25, %c0_18, %c0_19], %28 {strides = array<i32>} : memref<8x2x32xf32, #tpu.memory_space<vmem>>, vector<1x2x32xf32>,
    %c1_i32 = arith.constant 1 : i32
    %cst_20 = arith.constant 1.000000e+00 : f32
    %29 = vector.broadcast %cst_20 : f32 to vector<2x32xf32>
    %30 = arith.cmpf oge, %24, %29 : vector<2x32xf32>
    %cst_21 = arith.constant 0.899999976 : f32
    %31 = vector.broadcast %cst_21 : f32 to vector<2x32xf32>
    %32 = arith.mulf %31, %24 : vector<2x32xf32>
    %cst_22 = arith.constant 0.000000e+00 : f32
    %33 = vector.broadcast %cst_22 : f32 to vector<2x32xf32>
    %34 = arith.select %30, %33, %32 : vector<2x32xi1>, vector<2x32xf32>
    %35 = arith.index_cast %c1_i32 : i32 to index
    %c0_23 = arith.constant 0 : index
    %c0_24 = arith.constant 0 : index
    %36 = vector.load %arg13[%35, %c0_23, %c0_24] : memref<8x2x32xf32, #tpu.memory_space<vmem>>, vector<1x2x32xf32>
    %37 = vector.shape_cast %36 : vector<1x2x32xf32> to vector<2x32xf32>
    %38 = arith.addf %34, %37 : vector<2x32xf32>
    %39 = arith.index_cast %c1_i32 : i32 to index
    %c0_25 = arith.constant 0 : index
    %c0_26 = arith.constant 0 : index
    %40 = vector.load %arg13[%39, %c0_25, %c0_26] : memref<8x2x32xf32, #tpu.memory_space<vmem>>, vector<1x2x32xf32>
    %41 = vector.shape_cast %40 : vector<1x2x32xf32> to vector<2x32xf32>
    %42 = vector.shape_cast %38 : vector<2x32xf32> to vector<1x2x32xf32>
    tpu.vector_store %arg13[%39, %c0_25, %c0_26], %42 {strides = array<i32>} : memref<8x2x32xf32, #tpu.memory_space<vmem>>, vector<1x2x32xf32>,
    %c2_i32 = arith.constant 2 : i32
    %cst_27 = arith.constant 1.000000e+00 : f32
    %43 = vector.broadcast %cst_27 : f32 to vector<2x32xf32>
    %44 = arith.cmpf oge, %38, %43 : vector<2x32xf32>
    %cst_28 = arith.constant 0.899999976 : f32
    %45 = vector.broadcast %cst_28 : f32 to vector<2x32xf32>
    %46 = arith.mulf %45, %38 : vector<2x32xf32>
    %cst_29 = arith.constant 0.000000e+00 : f32
    %47 = vector.broadcast %cst_29 : f32 to vector<2x32xf32>
    %48 = arith.select %44, %47, %46 : vector<2x32xi1>, vector<2x32xf32>
    %49 = arith.index_cast %c2_i32 : i32 to index
    %c0_30 = arith.constant 0 : index
    %c0_31 = arith.constant 0 : index
    %50 = vector.load %arg13[%49, %c0_30, %c0_31] : memref<8x2x32xf32, #tpu.memory_space<vmem>>, vector<1x2x32xf32>
    %51 = vector.shape_cast %50 : vector<1x2x32xf32> to vector<2x32xf32>
    %52 = arith.addf %48, %51 : vector<2x32xf32>
    %53 = arith.index_cast %c2_i32 : i32 to index
    %c0_32 = arith.constant 0 : index
    %c0_33 = arith.constant 0 : index
    %54 = vector.load %arg13[%53, %c0_32, %c0_33] : memref<8x2x32xf32, #tpu.memory_space<vmem>>, vector<1x2x32xf32>
    %55 = vector.shape_cast %54 : vector<1x2x32xf32> to vector<2x32xf32>
    %56 = vector.shape_cast %52 : vector<2x32xf32> to vector<1x2x32xf32>
    tpu.vector_store %arg13[%53, %c0_32, %c0_33], %56 {strides = array<i32>} : memref<8x2x32xf32, #tpu.memory_space<vmem>>, vector<1x2x32xf32>,
    %c3_i32 = arith.constant 3 : i32
    %cst_34 = arith.constant 1.000000e+00 : f32
    %57 = vector.broadcast %cst_34 : f32 to vector<2x32xf32>
    %58 = arith.cmpf oge, %52, %57 : vector<2x32xf32>
    %cst_35 = arith.constant 0.899999976 : f32
    %59 = vector.broadcast %cst_35 : f32 to vector<2x32xf32>
    %60 = arith.mulf %59, %52 : vector<2x32xf32>
    %cst_36 = arith.constant 0.000000e+00 : f32
    %61 = vector.broadcast %cst_36 : f32 to vector<2x32xf32>
    %62 = arith.select %58, %61, %60 : vector<2x32xi1>, vector<2x32xf32>
    %63 = arith.index_cast %c3_i32 : i32 to index
    %c0_37 = arith.constant 0 : index
    %c0_38 = arith.constant 0 : index
    %64 = vector.load %arg13[%63, %c0_37, %c0_38] : memref<8x2x32xf32, #tpu.memory_space<vmem>>, vector<1x2x32xf32>
    %65 = vector.shape_cast %64 : vector<1x2x32xf32> to vector<2x32xf32>
    %66 = arith.addf %62, %65 : vector<2x32xf32>
    %67 = arith.index_cast %c3_i32 : i32 to index
    %c0_39 = arith.constant 0 : index
    %c0_40 = arith.constant 0 : index
    %68 = vector.load %arg13[%67, %c0_39, %c0_40] : memref<8x2x32xf32, #tpu.memory_space<vmem>>, vector<1x2x32xf32>
    %69 = vector.shape_cast %68 : vector<1x2x32xf32> to vector<2x32xf32>
    %70 = vector.shape_cast %66 : vector<2x32xf32> to vector<1x2x32xf32>
    tpu.vector_store %arg13[%67, %c0_39, %c0_40], %70 {strides = array<i32>} : memref<8x2x32xf32, #tpu.memory_space<vmem>>, vector<1x2x32xf32>,
    %c4_i32 = arith.constant 4 : i32
    %cst_41 = arith.constant 1.000000e+00 : f32
    %71 = vector.broadcast %cst_41 : f32 to vector<2x32xf32>
    %72 = arith.cmpf oge, %66, %71 : vector<2x32xf32>
    %cst_42 = arith.constant 0.899999976 : f32
    %73 = vector.broadcast %cst_42 : f32 to vector<2x32xf32>
    %74 = arith.mulf %73, %66 : vector<2x32xf32>
    %cst_43 = arith.constant 0.000000e+00 : f32
    %75 = vector.broadcast %cst_43 : f32 to vector<2x32xf32>
    %76 = arith.select %72, %75, %74 : vector<2x32xi1>, vector<2x32xf32>
    %77 = arith.index_cast %c4_i32 : i32 to index
    %c0_44 = arith.constant 0 : index
    %c0_45 = arith.constant 0 : index
    %78 = vector.load %arg13[%77, %c0_44, %c0_45] : memref<8x2x32xf32, #tpu.memory_space<vmem>>, vector<1x2x32xf32>
    %79 = vector.shape_cast %78 : vector<1x2x32xf32> to vector<2x32xf32>
    %80 = arith.addf %76, %79 : vector<2x32xf32>
    %81 = arith.index_cast %c4_i32 : i32 to index
    %c0_46 = arith.constant 0 : index
    %c0_47 = arith.constant 0 : index
    %82 = vector.load %arg13[%81, %c0_46, %c0_47] : memref<8x2x32xf32, #tpu.memory_space<vmem>>, vector<1x2x32xf32>
    %83 = vector.shape_cast %82 : vector<1x2x32xf32> to vector<2x32xf32>
    %84 = vector.shape_cast %80 : vector<2x32xf32> to vector<1x2x32xf32>
    tpu.vector_store %arg13[%81, %c0_46, %c0_47], %84 {strides = array<i32>} : memref<8x2x32xf32, #tpu.memory_space<vmem>>, vector<1x2x32xf32>,
    %c5_i32 = arith.constant 5 : i32
    %cst_48 = arith.constant 1.000000e+00 : f32
    %85 = vector.broadcast %cst_48 : f32 to vector<2x32xf32>
    %86 = arith.cmpf oge, %80, %85 : vector<2x32xf32>
    %cst_49 = arith.constant 0.899999976 : f32
    %87 = vector.broadcast %cst_49 : f32 to vector<2x32xf32>
    %88 = arith.mulf %87, %80 : vector<2x32xf32>
    %cst_50 = arith.constant 0.000000e+00 : f32
    %89 = vector.broadcast %cst_50 : f32 to vector<2x32xf32>
    %90 = arith.select %86, %89, %88 : vector<2x32xi1>, vector<2x32xf32>
    %91 = arith.index_cast %c5_i32 : i32 to index
    %c0_51 = arith.constant 0 : index
    %c0_52 = arith.constant 0 : index
    %92 = vector.load %arg13[%91, %c0_51, %c0_52] : memref<8x2x32xf32, #tpu.memory_space<vmem>>, vector<1x2x32xf32>
    %93 = vector.shape_cast %92 : vector<1x2x32xf32> to vector<2x32xf32>
    %94 = arith.addf %90, %93 : vector<2x32xf32>
    %95 = arith.index_cast %c5_i32 : i32 to index
    %c0_53 = arith.constant 0 : index
    %c0_54 = arith.constant 0 : index
    %96 = vector.load %arg13[%95, %c0_53, %c0_54] : memref<8x2x32xf32, #tpu.memory_space<vmem>>, vector<1x2x32xf32>
    %97 = vector.shape_cast %96 : vector<1x2x32xf32> to vector<2x32xf32>
    %98 = vector.shape_cast %94 : vector<2x32xf32> to vector<1x2x32xf32>
    tpu.vector_store %arg13[%95, %c0_53, %c0_54], %98 {strides = array<i32>} : memref<8x2x32xf32, #tpu.memory_space<vmem>>, vector<1x2x32xf32>,
    %c6_i32 = arith.constant 6 : i32
    %cst_55 = arith.constant 1.000000e+00 : f32
    %99 = vector.broadcast %cst_55 : f32 to vector<2x32xf32>
    %100 = arith.cmpf oge, %94, %99 : vector<2x32xf32>
    %cst_56 = arith.constant 0.899999976 : f32
    %101 = vector.broadcast %cst_56 : f32 to vector<2x32xf32>
    %102 = arith.mulf %101, %94 : vector<2x32xf32>
    %cst_57 = arith.constant 0.000000e+00 : f32
    %103 = vector.broadcast %cst_57 : f32 to vector<2x32xf32>
    %104 = arith.select %100, %103, %102 : vector<2x32xi1>, vector<2x32xf32>
    %105 = arith.index_cast %c6_i32 : i32 to index
    %c0_58 = arith.constant 0 : index
    %c0_59 = arith.constant 0 : index
    %106 = vector.load %arg13[%105, %c0_58, %c0_59] : memref<8x2x32xf32, #tpu.memory_space<vmem>>, vector<1x2x32xf32>
    %107 = vector.shape_cast %106 : vector<1x2x32xf32> to vector<2x32xf32>
    %108 = arith.addf %104, %107 : vector<2x32xf32>
    %109 = arith.index_cast %c6_i32 : i32 to index
    %c0_60 = arith.constant 0 : index
    %c0_61 = arith.constant 0 : index
    %110 = vector.load %arg13[%109, %c0_60, %c0_61] : memref<8x2x32xf32, #tpu.memory_space<vmem>>, vector<1x2x32xf32>
    %111 = vector.shape_cast %110 : vector<1x2x32xf32> to vector<2x32xf32>
    %112 = vector.shape_cast %108 : vector<2x32xf32> to vector<1x2x32xf32>
    tpu.vector_store %arg13[%109, %c0_60, %c0_61], %112 {strides = array<i32>} : memref<8x2x32xf32, #tpu.memory_space<vmem>>, vector<1x2x32xf32>,
    %c7_i32 = arith.constant 7 : i32
    %cst_62 = arith.constant 1.000000e+00 : f32
    %113 = vector.broadcast %cst_62 : f32 to vector<2x32xf32>
    %114 = arith.cmpf oge, %108, %113 : vector<2x32xf32>
    %cst_63 = arith.constant 0.899999976 : f32
    %115 = vector.broadcast %cst_63 : f32 to vector<2x32xf32>
    %116 = arith.mulf %115, %108 : vector<2x32xf32>
    %cst_64 = arith.constant 0.000000e+00 : f32
    %117 = vector.broadcast %cst_64 : f32 to vector<2x32xf32>
    %118 = arith.select %114, %117, %116 : vector<2x32xi1>, vector<2x32xf32>
    %119 = arith.index_cast %c7_i32 : i32 to index
    %c0_65 = arith.constant 0 : index
    %c0_66 = arith.constant 0 : index
    %120 = vector.load %arg13[%119, %c0_65, %c0_66] : memref<8x2x32xf32, #tpu.memory_space<vmem>>, vector<1x2x32xf32>
    %121 = vector.shape_cast %120 : vector<1x2x32xf32> to vector<2x32xf32>
    %122 = arith.addf %118, %121 : vector<2x32xf32>
    %123 = arith.index_cast %c7_i32 : i32 to index
    %c0_67 = arith.constant 0 : index
    %c0_68 = arith.constant 0 : index
    %124 = vector.load %arg13[%123, %c0_67, %c0_68] : memref<8x2x32xf32, #tpu.memory_space<vmem>>, vector<1x2x32xf32>
    %125 = vector.shape_cast %124 : vector<1x2x32xf32> to vector<2x32xf32>
    %126 = vector.shape_cast %122 : vector<2x32xf32> to vector<1x2x32xf32>
    tpu.vector_store %arg13[%123, %c0_67, %c0_68], %126 {strides = array<i32>} : memref<8x2x32xf32, #tpu.memory_space<vmem>>, vector<1x2x32xf32>,
    %c8_i32 = arith.constant 8 : i32
    %c0_69 = arith.constant 0 : index
    %c0_70 = arith.constant 0 : index
    %127 = vector.load %arg14[%c0_69, %c0_70] : memref<2x32xf32, #tpu.memory_space<vmem>>, vector<2x32xf32>
    tpu.vector_store %arg14[%c0_69, %c0_70], %122 {strides = array<i32>} : memref<2x32xf32, #tpu.memory_space<vmem>>, vector<2x32xf32>,
    %c0_71 = arith.constant 0 : index
    %c0_72 = arith.constant 0 : index
    %c0_73 = arith.constant 0 : index
    %128 = vector.load %arg13[%c0_71, %c0_72, %c0_73] : memref<8x2x32xf32, #tpu.memory_space<vmem>>, vector<8x2x32xf32>
    %c0_74 = arith.constant 0 : index
    %c0_75 = arith.constant 0 : index
    %c0_76 = arith.constant 0 : index
    %129 = vector.load %arg12[%c0_74, %c0_75, %c0_76] : memref<8x2x32xf32, #tpu.memory_space<vmem>>, vector<8x2x32xf32>
    tpu.vector_store %arg12[%c0_74, %c0_75, %c0_76], %128 {strides = array<i32>} : memref<8x2x32xf32, #tpu.memory_space<vmem>>, vector<8x2x32xf32>,
    %c0_77 = arith.constant 0 : index
    %c0_78 = arith.constant 0 : index
    %c0_79 = arith.constant 0 : index
    %130 = vector.load %arg13[%c0_77, %c0_78, %c0_79] : memref<8x2x32xf32, #tpu.memory_space<vmem>>, vector<8x2x32xf32>
    %131 = vector.shape_cast %130 : vector<8x2x32xf32> to vector<16x32xf32>
    %132 = arith.truncf %131 : vector<16x32xf32> to vector<16x32xbf16>
    %c0_80 = arith.constant 0 : index
    %c0_81 = arith.constant 0 : index
    %133 = vector.load %arg5[%c0_80, %c0_81] : memref<32x32xbf16, #tpu.memory_space<vmem>>, vector<32x32xbf16>
    %cst_82 = arith.constant dense<0.000000e+00> : vector<16x32xf32>
    %134 = tpu.matmul %132, %133, %cst_82 {dimension_numbers = #tpu.dot_dimension_numbers<[1], [0], [0], [1], [0, 0, 1, 1], [], []>} : vector<16x32xbf16>, vector<32x32xbf16>, vector<16x32xf32> -> vector<16x32xf32>
    %c0_83 = arith.constant 0 : index
    %c0_84 = arith.constant 0 : index
    %135 = vector.load %arg6[%c0_83, %c0_84] : memref<1x32xf32, #tpu.memory_space<vmem>>, vector<1x32xf32>
    %136 = vector.broadcast %135 : vector<1x32xf32> to vector<16x32xf32>
    %137 = arith.addf %134, %136 : vector<16x32xf32>
    %cst_85 = arith.constant 0.000000e+00 : f32
    %138 = vector.broadcast %cst_85 : f32 to vector<16x32xf32>
    %139 = arith.maximumf %137, %138 : vector<16x32xf32>
    %140 = arith.truncf %139 : vector<16x32xf32> to vector<16x32xbf16>
    %c0_86 = arith.constant 0 : index
    %c0_87 = arith.constant 0 : index
    %141 = vector.load %arg7[%c0_86, %c0_87] : memref<32x32xbf16, #tpu.memory_space<vmem>>, vector<32x32xbf16>
    %cst_88 = arith.constant dense<0.000000e+00> : vector<16x32xf32>
    %142 = tpu.matmul %140, %141, %cst_88 {dimension_numbers = #tpu.dot_dimension_numbers<[1], [0], [0], [1], [0, 0, 1, 1], [], []>} : vector<16x32xbf16>, vector<32x32xbf16>, vector<16x32xf32> -> vector<16x32xf32>
    %c0_89 = arith.constant 0 : index
    %c0_90 = arith.constant 0 : index
    %143 = vector.load %arg8[%c0_89, %c0_90] : memref<1x32xf32, #tpu.memory_space<vmem>>, vector<1x32xf32>
    %144 = vector.broadcast %143 : vector<1x32xf32> to vector<16x32xf32>
    %145 = arith.addf %142, %144 : vector<16x32xf32>
    %cst_91 = arith.constant 0.000000e+00 : f32
    %146 = vector.broadcast %cst_91 : f32 to vector<16x32xf32>
    %147 = arith.maximumf %145, %146 : vector<16x32xf32>
    %148 = arith.truncf %147 : vector<16x32xf32> to vector<16x32xbf16>
    %c0_92 = arith.constant 0 : index
    %c0_93 = arith.constant 0 : index
    %149 = vector.load %arg9[%c0_92, %c0_93] : memref<32x4xbf16, #tpu.memory_space<vmem>>, vector<32x4xbf16>
    %cst_94 = arith.constant dense<0.000000e+00> : vector<16x4xf32>
    %150 = tpu.matmul %148, %149, %cst_94 {dimension_numbers = #tpu.dot_dimension_numbers<[1], [0], [0], [1], [0, 0, 1, 1], [], []>} : vector<16x32xbf16>, vector<32x4xbf16>, vector<16x4xf32> -> vector<16x4xf32>
    %c0_95 = arith.constant 0 : index
    %c0_96 = arith.constant 0 : index
    %151 = vector.load %arg10[%c0_95, %c0_96] : memref<1x4xf32, #tpu.memory_space<vmem>>, vector<1x4xf32>
    %152 = vector.broadcast %151 : vector<1x4xf32> to vector<16x4xf32>
    %153 = arith.addf %150, %152 : vector<16x4xf32>
    %154 = vector.shape_cast %153 : vector<16x4xf32> to vector<8x2x4xf32>
    %c0_97 = arith.constant 0 : index
    %c0_98 = arith.constant 0 : index
    %c0_99 = arith.constant 0 : index
    %155 = vector.load %arg11[%c0_97, %c0_98, %c0_99] : memref<8x2x4xf32, #tpu.memory_space<vmem>>, vector<8x2x4xf32>
    tpu.vector_store %arg11[%c0_97, %c0_98, %c0_99], %154 {strides = array<i32>} : memref<8x2x4xf32, #tpu.memory_space<vmem>>, vector<8x2x4xf32>,
    return
  }
  func.func @transform_0(%arg0: i32, %arg1: i32) -> (i32, i32, i32) {
    %c0_i32 = arith.constant 0 : i32
    %c0_i32_0 = arith.constant 0 : i32
    return %arg1, %arg0, %c0_i32 : i32, i32, i32
  }
  func.func @transform_1(%arg0: i32, %arg1: i32) -> (i32, i32) {
    %c0_i32 = arith.constant 0 : i32
    %c0_i32_0 = arith.constant 0 : i32
    %c0_i32_1 = arith.constant 0 : i32
    return %c0_i32, %c0_i32_0 : i32, i32
  }
  func.func @transform_2(%arg0: i32, %arg1: i32) -> (i32, i32) {
    %c0_i32 = arith.constant 0 : i32
    %c0_i32_0 = arith.constant 0 : i32
    %c0_i32_1 = arith.constant 0 : i32
    return %c0_i32, %c0_i32_0 : i32, i32
  }
  func.func @transform_3(%arg0: i32, %arg1: i32) -> (i32, i32) {
    %c0_i32 = arith.constant 0 : i32
    %c0_i32_0 = arith.constant 0 : i32
    %c0_i32_1 = arith.constant 0 : i32
    return %c0_i32, %c0_i32_0 : i32, i32
  }
  func.func @transform_4(%arg0: i32, %arg1: i32) -> (i32, i32) {
    %c0_i32 = arith.constant 0 : i32
    %c0_i32_0 = arith.constant 0 : i32
    %c0_i32_1 = arith.constant 0 : i32
    return %c0_i32, %c0_i32_0 : i32, i32
  }
  func.func @transform_5(%arg0: i32, %arg1: i32) -> (i32, i32) {
    %c0_i32 = arith.constant 0 : i32
    %c0_i32_0 = arith.constant 0 : i32
    %c0_i32_1 = arith.constant 0 : i32
    return %c0_i32, %c0_i32_0 : i32, i32
  }
  func.func @transform_6(%arg0: i32, %arg1: i32) -> (i32, i32) {
    %c0_i32 = arith.constant 0 : i32
    %c0_i32_0 = arith.constant 0 : i32
    %c0_i32_1 = arith.constant 0 : i32
    return %c0_i32, %c0_i32_0 : i32, i32
  }
  func.func @transform_7(%arg0: i32, %arg1: i32) -> (i32, i32) {
    %c0_i32 = arith.constant 0 : i32
    %c0_i32_0 = arith.constant 0 : i32
    %c0_i32_1 = arith.constant 0 : i32
    return %c0_i32, %c0_i32_0 : i32, i32
  }
  func.func @transform_8(%arg0: i32, %arg1: i32) -> (i32, i32) {
    %c0_i32 = arith.constant 0 : i32
    %c0_i32_0 = arith.constant 0 : i32
    %c0_i32_1 = arith.constant 0 : i32
    return %c0_i32, %c0_i32_0 : i32, i32
  }
  func.func @transform_9(%arg0: i32, %arg1: i32) -> (i32, i32, i32) {
    %c0_i32 = arith.constant 0 : i32
    %c0_i32_0 = arith.constant 0 : i32
    return %arg1, %arg0, %c0_i32 : i32, i32, i32
  }
  func.func @transform_10(%arg0: i32, %arg1: i32) -> (i32, i32, i32) {
    %c0_i32 = arith.constant 0 : i32
    %c0_i32_0 = arith.constant 0 : i32
    return %arg1, %arg0, %c0_i32 : i32, i32, i32
  }
}

</mosaic_0001>

<bundles_post_ra>
// kernel: tpu_custom_call.1
= control target key start
LH: loop header
LB: loop body
LE: loop exit
PB: predicated region body
PF: predicated region fallthrough
CT: control target
= control target key end

     0   :  { %16 = vsyncpa [#allocation5], 0  ;;  %s1870_s0 = inlined_call_operand.vmem [shape: bf16[16,2,16], index: 0, kind: input, shape index: {}]   ;;  %s1871_s1 = inlined_call_operand.hbm [shape: bf16[16,32], index: 1, kind: input, shape index: {}]   ;;  %s1872_s2 = inlined_call_operand.vmem [shape: f32[1,32], index: 2, kind: input, shape index: {}]   ;;  %s1873_s3 = inlined_call_operand.hbm [shape: bf16[32,32], index: 3, kind: input, shape index: {}]   ;;  %s1874_s4 = inlined_call_operand.vmem [shape: f32[1,32], index: 4, kind: input, shape index: {}]   ;;  %s1875_s5 = inlined_call_operand.hbm [shape: bf16[32,32], index: 5, kind: input, shape index: {}]   ;;  %s1876_s6 = inlined_call_operand.vmem [shape: f32[1,32], index: 6, kind: input, shape index: {}]   ;;  %s1877_s7 = inlined_call_operand.vmem [shape: bf16[32,4], index: 7, kind: input, shape index: {}]   ;;  %s1878_s8 = inlined_call_operand.vmem [shape: f32[1,4], index: 8, kind: input, shape index: {}]   ;;  %s1879_s9 = inlined_call_operand.vmem [shape: f32[16,2,4], index: 9, kind: output, shape index: {0}]   ;;  %s1880_s10 = inlined_call_operand.hbm [shape: f32[16,2,32], index: 10, kind: output, shape index: {1}]  }
   0x1   :  { %17 = vsyncpa [#allocation8], 0 }
   0x2   :  { %18 = vsyncpa [#allocation6], 0 }
   0x3   :  { %20 = vsyncpa [#allocation6 + $0x1], 0  ;;  %s1589_s13 = smov 0   ;;  %s1591_s14 = smov 0  }
   0x4   :  { %s1593_s15 = smov 0   ;;  %s1595_s16 = smov 0  }
   0x5   :  { %s1597_s17 = smov 0   ;;  %s1599_s18 = smov 0  }
   0x6 LB: > { %1883 = sst [smem:[#allocation14_spill]] %s1516_s17  ;;  %s1179_s19 = sadd.s32 4294967295, %s1520_s18   ;;  %s1520_s18 = sphi %s1599_s18, %s26_s18   ;;  %s1516_s17 = sphi %s1597_s17, %s1892_s17   ;;  %s1512_s16 = sphi %s1595_s16, %s1891_s16   ;;  %s1508_s15 = sphi %s1593_s15, %s1895_s15   ;;  %s1504_s14 = sphi %s1591_s14, %s1894_s14   ;;  %s1500_s13 = sphi %s1589_s13, %s1893_s13  }
   0x7   : > { %s1180_s20 = sadd.s32 4294967294, %s1520_s18   ;;  %s35_s21 = sadd.s32 1, %s1516_s17 }
   0x8   : > { %s271_s22 = sadd.s32 1, %s1508_s15  ;;  %p36_p0 = scmp.ge.s32.totalorder %s35_s21, 2 }
   0x9   : > { %p281_p1 = scmp.ne.s32.totalorder %s1508_s15, %s1504_s14  ;;  %p282_p2 = scmp.eq.s32.totalorder %s1179_s19, 1 }
   0xa   : > { %p287_p3 = scmp.ne.s32.totalorder %s1504_s14, %s1500_s13  ;;  %s1897_s21 = smov (%p36_p0, %s35_s21), 0 }
   0xb   : > { %1884 = sst [smem:[#allocation15_spill]] %s1897_s21  ;;  %p1629_p4 = por %p282_p2, %p281_p1 }
   0xc   : > { %p288_p5 = scmp.eq.s32.totalorder %s1180_s20, 1  ;;  %s266_s24 = ssub.s32 %s1516_s17, %s1897_s21 }
   0xd   : > { %p1181_p6 = scmp.ge.s32.totalorder %s1520_s18, 1  ;;  %p269_p7 = scmp.eq.s32.totalorder %s266_s24, 0 }
   0xe   : > { %p1636_p8 = por %p288_p5, %p287_p3  ;;  %p295_p9 = scmp.lt.s32.totalorder %s1520_s18, 3 }
   0xf   : > { %s1642_s26 = scalar_select %p269_p7, %s1508_s15, %s271_s22  }
  0x10   : > { %s1886_s25 = scalar_select %p1636_p8, 1, 0 }
  0x11   : > { %p1644_p10 = pnand %p1181_p6, %p295_p9  ;;  %p1648_p11 = scmp.eq.s32.totalorder %s1179_s19, 0 }
  0x12   : > { %s1522_s29 = smov [#allocation7]   ;;  %s1523_s12 = smov [#allocation4]  }
  0x13   : > { %p1271_p12 = pneg %p1644_p10  ;;  %s323_s30 = sshll.u32 %s1522_s29, 4  ;;  %s324_s30 = int_to_ptr.vmem [resolvable:$true] %s323_s30 }
  0x14   : > { %s307_s20 = sshll.u32 %s1523_s12, 4  ;;  %s1369_s19 = scalar_lea.vmem %s324_s30, 256  ;;  %s308_s20 = int_to_ptr.vmem [resolvable:$true] %s307_s20 }
  0x15   : > { %p1656_p13 = pnand %p1648_p11, %p1271_p12  ;;  %p1370_p1 = scmp.ne.s32.totalorder %s324_s30, %s1369_s19 }
  0x16   : > { %p1377_p5 = scmp.lt.s32.totalorder %s324_s30, %s324_s30  ;;  %p1378_p6 = scmp.lt.s32.totalorder %s1369_s19, %s1369_s19 }
  0x17   : > { %p1360_p0 = pneg %p1656_p13 }
  0x18   : > { %p1379_p7 = por %p1378_p6, %p1377_p5 }
  0x19   : > { %p1372_p2 = pnand %p1370_p1, %p1360_p0 }
  0x1b   : > { %p1373_p3 = pneg %p1372_p2 }
  0x1d   : > { %p1380_p9 = pnand %p1379_p7, %p1373_p3 }
  0x1f   : > { %1383 = shalt.err (!%p1380_p9)
}
  0x20   : > { %s1524_s22 = smov 64   ;;  %s1525_s24 = smov 4  }
  0x21   : > { %1277 = dma.hbm_to_vmem [thread:$0]  (!%p1656_p13), %s1873_s3, 256, %s324_s30, [#allocation8], %s1524_s22, %s1524_s22, %s1525_s24  }
  0x22   : > { %s1395_s21 = scalar_lea.vmem %s308_s20, 128  ;;  %p1403_p8 = scmp.lt.s32.totalorder %s308_s20, %s308_s20 }
  0x23   : > { %p1396_p12 = scmp.ne.s32.totalorder %s308_s20, %s1395_s21  ;;  %p1404_p5 = scmp.lt.s32.totalorder %s1395_s21, %s1395_s21 }
  0x25   : > { %p1398_p1 = pnand %p1396_p12, %p1360_p0  ;;  %p1405_p3 = por %p1404_p5, %p1403_p8 }
  0x27   : > { %p1399_p2 = pneg %p1398_p1 }
  0x29   : > { %p1406_p6 = pnand %p1405_p3, %p1399_p2 }
  0x2b   : > { %1409 = shalt.err (!%p1406_p6)
}
  0x2c   : > { %1274 = dma.hbm_to_vmem [thread:$0]  (!%p1656_p13), %s1871_s1, 128, %s308_s20, [#allocation5], %s1524_s22, %s1524_s22, %s1525_s24  }
  0x2d   : > { %s1526_s30 = smov [#allocation9]  }
  0x2e   : > { %s339_s29 = sshll.u32 %s1526_s30, 4  ;;  %s340_s29 = int_to_ptr.vmem [resolvable:$true] %s339_s29 }
  0x2f   : > { %s1421_s12 = scalar_lea.vmem %s340_s29, 256  ;;  %p1429_p1 = scmp.lt.s32.totalorder %s340_s29, %s340_s29 }
  0x30   : > { %p1422_p7 = scmp.ne.s32.totalorder %s340_s29, %s1421_s12  ;;  %p1430_p8 = scmp.lt.s32.totalorder %s1421_s12, %s1421_s12 }
  0x32   : > { %p1424_p9 = pnand %p1422_p7, %p1360_p0  ;;  %p1431_p2 = por %p1430_p8, %p1429_p1 }
  0x34   : > { %p1425_p12 = pneg %p1424_p9 }
  0x36   : > { %p1432_p5 = pnand %p1431_p2, %p1425_p12 }
  0x38   : > { %1435 = shalt.err (!%p1432_p5)
}
  0x39   : > { %1280 = dma.hbm_to_vmem [thread:$0]  (!%p1656_p13), %s1875_s5, 256, %s340_s29, [#allocation8], %s1524_s22, %s1524_s22, %s1525_s24  }
  0x3a   : > { %375 = sbr.rel (%p1644_p10) target bundleno = 965 (0x3c5), region = 56 }
  0x3f   : > { %1487 = dma.done.wait (%p1648_p11), [#allocation5], 128  }
  0x40   : > { %1489 = vsyncadd (%p1648_p11), [#allocation5], 4294967168 }
  0x41   : > { %1491 = dma.done.wait (%p1648_p11), [#allocation8], 512  }
  0x42   : > { %1493 = vsyncadd (%p1648_p11), [#allocation8], 4294966784  ;;  %s428_s11 = sand.u32 1, %s1504_s14   ;;  %s1191_s20 = sshll.u32 %s1512_s16, 3 }
  0x43   : > { %s1190_s27 = sshll.u32 %s428_s11, 4  ;;  %p432_p10 = scmp.lt.s32.totalorder %s1191_s20, 15 }
  0x44   : > { %s1708_s28 = scalar_lea.vmem [#allocation10], %s1190_s27  ;;  %p1194_p11 = scmp.ne.s32.totalorder %s1512_s16, 0 }
  0x45   : > { %s1899_s20 = smov (!%p432_p10, %s1191_s20), 15 }
  0x46   : > { %s437_s19 = scalar_lea.vmem %s1870_s0, %s1899_s20  ;;  %s1193_s30 = sshll.u32 %s1899_s20, 1 }
  0x47   : > { %s1706_s21 = scalar_lea.vmem %s1879_s9, %s1193_s30  ;;  %453 = sbr.rel (%p1194_p11) target bundleno = 78 (0x4e), region = 72 }
  0x4c   : > { %vm454_vm0 = vcmask 254976   ;;  %v1527_v0 = vmov 0.0  }
  0x4d   : > { %455 = vst.msk [vmem:[#allocation3] sm:$0x3] %vm454_vm0, %v1527_v0 }
  0x4e PF: > { %v1351_v1 = vld [vmem:[#allocation4] sm:$0xff]   ;;  %v1528_v2 = vmov 0.0   ;;  %v456_v3 = vld [vmem:[%s437_s19] sm:$0x1]  ;;  %v457_v4 = vld [vmem:[%s437_s19 + $0x1] sm:$0x1]  ;;  %v485_v5 = vlaneseq }
  0x4f   : > { %1227 = vmatprep.subr.bf16.mxu0 %v1528_v2  ;;  %1233 = vmatprep.subr.bf16.mxu1 %v1528_v2  ;;  %vm1529_vm1 = vmmov 0   ;;  %v458_v6 = vld [vmem:[%s437_s19 + $0x2] sm:$0x1]  ;;  %v459_v7 = vld [vmem:[%s437_s19 + $0x3] sm:$0x1]  ;;  %v464_v12 = vunpack.c.l.bf16 %v456_v3  ;;  %v465_v13 = vunpack.c.l.bf16 %v457_v4  ;;  %vm532_vm2 = vcmask 130048  }
  0x50   : > { %1228 = vmatpush3.bf16.msra.mxu0 %v1351_v1  ;;  %1229 = vmatprep.mubr.msk.bf16.mxu0 %vm1529_vm1, %v1528_v2  ;;  %v460_v8 = vld [vmem:[%s437_s19 + $0x4] sm:$0x1]  ;;  %v461_v9 = vld [vmem:[%s437_s19 + $0x5] sm:$0x1]  ;;  %v462_v10 = vld [vmem:[%s437_s19 + $0x6] sm:$0x1]  ;;  %v466_v14 = vunpack.c.l.bf16 %v458_v6  ;;  %v467_v15 = vunpack.c.l.bf16 %v459_v7 }
  0x51   : > { %v463_v11 = vld [vmem:[%s437_s19 + $0x7] sm:$0x1]  ;;  %1237 = vmatprep.mubr.msk.bf16.mxu1 %vm1529_vm1, %v1528_v2  ;;  %1241 = vmatprep.subr.bf16.mxu0 %v1528_v2  ;;  %v468_v16 = vunpack.c.l.bf16 %v460_v8  ;;  %v469_v17 = vunpack.c.l.bf16 %v461_v9  ;;  %v470_v18 = vunpack.c.l.bf16 %v462_v10  ;;  %v486_v20 = vshrl.u32 %v485_v5, 7  ;;  %v1353_v37 = vld [vmem:[#allocation7] sm:$0xff]   ;;  %s1215_s20 = sshll.u32 %s1512_s16, 8  ;;  %s1044_s27 = sshll.u32 %s1708_s28, 4  ;;  %s1798_s27 = int_to_ptr.vmem [resolvable:$true] %s1044_s27 }
  0x52   : > { %v471_v19 = vunpack.c.l.bf16 %v463_v11  ;;  %v1530_v21 = vmov 1983009808   ;;  %v480_v23 = vcombine.low %v464_v12, %v465_v13  ;;  %v481_v24 = vcombine.low %v466_v14, %v467_v15  ;;  %v1352_v36 = vld [vmem:[#allocation7 + $0x8] sm:$0xff]   ;;  %v1195_v38 = vld [vmem:[%s1872_s2] ss:$0 sm:$0xff]  ;;  %s1796_s19 = scalar_lea.hbm %s1880_s10, %s1215_s20  ;;  %s1802_s30 = scalar_lea.sflag [#allocation6], %s428_s11 }
  0x53   : > { %v483_v22 = vunpack.c.l.s4 %v1530_v21  ;;  %v497_v26 = vcombine.low %v468_v16, %v469_v17  ;;  %1234 = vmatpush3.bf16.msra.mxu1 %v1352_v36  ;;  %vm621_vm3 = vcmask 254976   ;;  %vm779_vm12 = vcmask 261120   ;;  %s1436_s29 = scalar_lea.vmem %s1798_s27, 256  ;;  %s1531_s16 = smov [#allocation10]  }
  0x54   : > { %v498_v27 = vcombine.low %v470_v18, %v471_v19  ;;  %1235 = vmatprep.subr.bf16.mxu1 %v1528_v2  ;;  %v630_v44 = vld [vmem:[#allocation3] sm:$0x3]  ;;  %p1437_p13 = scmp.ne.s32.totalorder %s1798_s27, %s1436_s29 }
  0x55   : > { %v484_v25 = vunpack.c.0.s8 %v483_v22  ;;  %v632_v49 = vmul.f32 0.9, %v630_v44  ;;  %vm631_vm4 = vcmp.ge.f32.partialorder %v630_v44, 1.0 }
  0x56   : > { %p1438_p0 = pnand %p1437_p13, %p1629_p4 }
  0x57   : > { %v1718_v28 = vsub.s32 %v484_v25, %v486_v20  ;;  %1236 = vmatpush3.bf16.msra.mxu1 %v1353_v37  ;;  %v633_v56 = vsel %vm631_vm4, 0.0, %v632_v49 }
  0x58   : > { %1249 = vmatprep.subr.bf16.mxu1 %v1528_v2  ;;  %p1439_p3 = pneg %p1438_p0 }
  0x59   : > { %v488_v29 = vrot.slane %v480_v23, %v1718_v28  ;;  %v495_v30 = vrot.slane %v481_v24, %v1718_v28  ;;  %v505_v31 = vrot.slane %v497_v26, %v1718_v28  ;;  %v512_v32 = vrot.slane %v498_v27, %v1718_v28 }
  0x5b   : > { %v496_v33 = vcombine.low %v488_v29, %v495_v30  ;;  %v513_v34 = vcombine.low %v505_v31, %v512_v32 }
  0x5d   : > { %v516_v35 = vpack.c.bf16 %v513_v34, %v496_v33 }
  0x5f   : > { %1230 = vmatmul.mubr.msk.bf16.vlgmr.msra.gmra.mxu0 %vm532_vm2, %v516_v35 }
  0x60   : > { %1245 = vmatprep.mubr.msk.bf16.mxu0 %vm1529_vm1, %v1528_v2 }
 0x11f   : > { %v570_v39 = vpop.f32.mrf.mxu0 }
 0x120   : > { %v571_v40 = vadd.f32 %v1195_v38, %v570_v39 }
 0x121   : > { %v1231_v41 = vpop.f32.mrf.mxu0 }
 0x122   : > { %v579_v42 = vcombine.high %v571_v40, %v571_v40  ;;  %v586_v43 = vrot.slane %v571_v40, %v1718_v28 }
 0x123   : > { %v573_v45 = vpop.f32.mrf.mxu0 }
 0x124   : > { %v593_v46 = vrot.slane %v579_v42, %v1718_v28  ;;  %v594_v47 = vcombine.high %v586_v43, %v586_v43  ;;  %622 = vst.msk [vmem:[#allocation2] sm:$0x3] %vm621_vm3, %v586_v43  ;;  %v574_v48 = vadd.f32 %v1195_v38, %v573_v45 }
 0x125   : > { %v1232_v50 = vpop.f32.mrf.mxu0 }
 0x126   : > { %v595_v51 = vcombine.high %v593_v46, %v593_v46  ;;  %623 = vst.msk [vmem:[#allocation2 + $0x2] sm:$0x3] %vm621_vm3, %v594_v47  ;;  %624 = vst.msk [vmem:[#allocation2 + $0x4] sm:$0x3] %vm621_vm3, %v593_v46  ;;  %v596_v52 = vcombine.high %v574_v48, %v574_v48  ;;  %v603_v53 = vrot.slane %v574_v48, %v1718_v28 }
 0x128   : > { %625 = vst.msk [vmem:[#allocation2 + $0x6] sm:$0x3] %vm621_vm3, %v595_v51  ;;  %v610_v54 = vrot.slane %v596_v52, %v1718_v28  ;;  %v611_v55 = vcombine.high %v603_v53, %v603_v53  ;;  %626 = vst.msk [vmem:[#allocation2 + $0x8] sm:$0x3] %vm621_vm3, %v603_v53  ;;  %v1354_v53 = vld [vmem:[#allocation9 + $0x8] sm:$0xff]  }
 0x129   : > { %1242 = vmatpush3.bf16.msra.mxu0 %v1354_v53 }
 0x12a   : > { %v612_v57 = vcombine.high %v610_v54, %v610_v54  ;;  %627 = vst.msk [vmem:[#allocation2 + $0xa] sm:$0x3] %vm621_vm3, %v611_v55  ;;  %628 = vst.msk [vmem:[#allocation2 + $0xc] sm:$0x3] %vm621_vm3, %v610_v54  ;;  %1243 = vmatprep.subr.bf16.mxu0 %v1528_v2  ;;  %v1355_v54 = vld [vmem:[#allocation9] sm:$0xff]  }
 0x12b   : > { %v634_v58 = vld [vmem:[#allocation2] sm:$0x3] }
 0x12c   : > { %v635_v59 = vadd.f32 %v634_v58, %v633_v56  ;;  %629 = vst.msk [vmem:[#allocation2 + $0xe] sm:$0x3] %vm621_vm3, %v612_v57  ;;  %v1198_v55 = vld [vmem:[%s1874_s4] ss:$0 sm:$0xff] }
 0x12d   : > { %v641_v62 = vld [vmem:[#allocation2 + $0x2] sm:$0x3]  ;;  %v648_v3 = vld [vmem:[#allocation2 + $0x4] sm:$0x3]  ;;  %1244 = vmatpush3.bf16.msra.mxu0 %v1355_v54 }
 0x12e   : > { %636 = vst.msk [vmem:[#allocation2] sm:$0x3] %vm621_vm3, %v635_v59  ;;  %vm637_vm5 = vcmp.ge.f32.partialorder %v635_v59, 1.0  ;;  %v638_v60 = vmul.f32 0.9, %v635_v59 }
 0x12f   : > { %v655_v8 = vld [vmem:[#allocation2 + $0x6] sm:$0x3]  ;;  %v662_v14 = vld [vmem:[#allocation2 + $0x8] sm:$0x3] }
 0x130   : > { %v639_v61 = vsel %vm637_vm5, 0.0, %v638_v60 }
 0x131   : > { %v642_v63 = vadd.f32 %v641_v62, %v639_v61  ;;  %v669_v18 = vld [vmem:[#allocation2 + $0xa] sm:$0x3]  ;;  %v676_v23 = vld [vmem:[#allocation2 + $0xc] sm:$0x3] }
 0x133   : > { %643 = vst.msk [vmem:[#allocation2 + $0x2] sm:$0x3] %vm621_vm3, %v642_v63  ;;  %vm644_vm6 = vcmp.ge.f32.partialorder %v642_v63, 1.0  ;;  %v645_v0 = vmul.f32 0.9, %v642_v63 }
 0x134   : > { %v683_v29 = vld [vmem:[#allocation2 + $0xe] sm:$0x3] }
 0x135   : > { %v646_v1 = vsel %vm644_vm6, 0.0, %v645_v0  ;;  %v687_v4 = vld [vmem:[#allocation2] sm:$0x3] }
 0x136   : > { %v649_v5 = vadd.f32 %v648_v3, %v646_v1  ;;  %695 = vst.msk [vmem:[%s1708_s28] sm:$0x3] %vm621_vm3, %v687_v4  ;;  %v703_v38 = vld [vmem:[#allocation2] sm:$0x3]  ;;  %v1356_v1 = vld [vmem:[%s1877_s7 + $0x8] sm:$0xff]  }
 0x137   : > { %v1357_v3 = vld [vmem:[%s1877_s7] sm:$0xff]  }
 0x138   : > { %650 = vst.msk [vmem:[#allocation2 + $0x4] sm:$0x3] %vm621_vm3, %v649_v5  ;;  %vm651_vm7 = vcmp.ge.f32.partialorder %v649_v5, 1.0  ;;  %v652_v6 = vmul.f32 0.9, %v649_v5 }
 0x139   : > { %v1202_v4 = vld [vmem:[%s1876_s6] ss:$0 sm:$0xff] }
 0x13a   : > { %v653_v7 = vsel %vm651_vm7, 0.0, %v652_v6  ;;  %v688_v9 = vld [vmem:[#allocation2 + $0x2] sm:$0x3] }
 0x13b   : > { %v656_v10 = vadd.f32 %v655_v8, %v653_v7  ;;  %696 = vst.msk [vmem:[%s1708_s28 + $0x2] sm:$0x3] %vm621_vm3, %v688_v9  ;;  %v704_v34 = vld [vmem:[#allocation2 + $0x2] sm:$0x3] }
 0x13c   : > { %v719_v40 = vcombine.low %v703_v38, %v704_v34 }
 0x13d   : > { %657 = vst.msk [vmem:[#allocation2 + $0x6] sm:$0x3] %vm621_vm3, %v656_v10  ;;  %vm658_vm8 = vcmp.ge.f32.partialorder %v656_v10, 1.0  ;;  %v659_v11 = vmul.f32 0.9, %v656_v10 }
 0x13e   : > { %v727_v47 = vrot.slane %v719_v40, %v1718_v28 }
 0x13f   : > { %v689_v12 = vld [vmem:[#allocation2 + $0x4] sm:$0x3]  ;;  %v660_v13 = vsel %vm658_vm8, 0.0, %v659_v11 }
 0x140   : > { %697 = vst.msk [vmem:[%s1708_s28 + $0x4] sm:$0x3] %vm621_vm3, %v689_v12  ;;  %v663_v15 = vadd.f32 %v662_v14, %v660_v13  ;;  %v705_v35 = vld [vmem:[#allocation2 + $0x4] sm:$0x3] }
 0x142   : > { %664 = vst.msk [vmem:[#allocation2 + $0x8] sm:$0x3] %vm621_vm3, %v663_v15  ;;  %vm665_vm9 = vcmp.ge.f32.partialorder %v663_v15, 1.0  ;;  %v666_v16 = vmul.f32 0.9, %v663_v15 }
 0x144   : > { %v667_v17 = vsel %vm665_vm9, 0.0, %v666_v16  ;;  %v690_v19 = vld [vmem:[#allocation2 + $0x6] sm:$0x3] }
 0x145   : > { %v670_v20 = vadd.f32 %v669_v18, %v667_v17  ;;  %698 = vst.msk [vmem:[%s1708_s28 + $0x6] sm:$0x3] %vm621_vm3, %v690_v19  ;;  %v706_v32 = vld [vmem:[#allocation2 + $0x6] sm:$0x3] }
 0x146   : > { %v720_v37 = vcombine.low %v705_v35, %v706_v32 }
 0x147   : > { %671 = vst.msk [vmem:[#allocation2 + $0xa] sm:$0x3] %vm621_vm3, %v670_v20  ;;  %vm672_vm10 = vcmp.ge.f32.partialorder %v670_v20, 1.0  ;;  %v673_v21 = vmul.f32 0.9, %v670_v20 }
 0x148   : > { %v734_v45 = vrot.slane %v720_v37, %v1718_v28 }
 0x149   : > { %v674_v22 = vsel %vm672_vm10, 0.0, %v673_v21  ;;  %v691_v24 = vld [vmem:[#allocation2 + $0x8] sm:$0x3] }
 0x14a   : > { %v677_v25 = vadd.f32 %v676_v23, %v674_v22  ;;  %699 = vst.msk [vmem:[%s1708_s28 + $0x8] sm:$0x3] %vm621_vm3, %v691_v24  ;;  %v707_v39 = vld [vmem:[#allocation2 + $0x8] sm:$0x3]  ;;  %v735_v50 = vcombine.low %v727_v47, %v734_v45 }
 0x14c   : > { %678 = vst.msk [vmem:[#allocation2 + $0xc] sm:$0x3] %vm621_vm3, %v677_v25  ;;  %vm679_vm11 = vcmp.ge.f32.partialorder %v677_v25, 1.0  ;;  %v680_v26 = vmul.f32 0.9, %v677_v25 }
 0x14e   : > { %v681_v27 = vsel %vm679_vm11, 0.0, %v680_v26  ;;  %v692_v30 = vld [vmem:[#allocation2 + $0xa] sm:$0x3] }
 0x14f   : > { %v684_v31 = vadd.f32 %v683_v29, %v681_v27  ;;  %700 = vst.msk [vmem:[%s1708_s28 + $0xa] sm:$0x3] %vm621_vm3, %v692_v30  ;;  %v708_v36 = vld [vmem:[#allocation2 + $0xa] sm:$0x3] }
 0x150   : > { %v736_v41 = vcombine.low %v707_v39, %v708_v36 }
 0x151   : > { %685 = vst.msk [vmem:[#allocation2 + $0xe] sm:$0x3] %vm621_vm3, %v684_v31  ;;  %686 = vst.msk [vmem:[#allocation3] sm:$0x3] %vm621_vm3, %v684_v31 }
 0x152   : > { %v744_v48 = vrot.slane %v736_v41, %v1718_v28 }
 0x153   : > { %v693_v33 = vld [vmem:[#allocation2 + $0xc] sm:$0x3] }
 0x154   : > { %701 = vst.msk [vmem:[%s1708_s28 + $0xc] sm:$0x3] %vm621_vm3, %v693_v33  ;;  %v709_v42 = vld [vmem:[#allocation2 + $0xc] sm:$0x3] }
 0x158   : > { %v710_v43 = vld [vmem:[#allocation2 + $0xe] sm:$0x3] }
 0x159   : > { %v694_v44 = vld [vmem:[#allocation2 + $0xe] sm:$0x3]  ;;  %v737_v46 = vcombine.low %v709_v42, %v710_v43 }
 0x15a   : > { %702 = vst.msk [vmem:[%s1708_s28 + $0xe] sm:$0x3] %vm621_vm3, %v694_v44  ;;  %s1440_s28 = sshll.u32 %s1531_s16, 4  ;;  %s1441_s28 = int_to_ptr.vmem [resolvable:$false] %s1440_s28 }
 0x15b   : > { %v751_v49 = vrot.slane %v737_v46, %v1718_v28  ;;  %s1442_s12 = scalar_lea.vmem %s1441_s28, 512  ;;  %p1443_p6 = scmp.lt.s32.totalorder %s1798_s27, %s1441_s28 }
 0x15c   : > { %p1444_p7 = scmp.lt.s32.totalorder %s1442_s12, %s1436_s29 }
 0x15d   : > { %v752_v51 = vcombine.low %v744_v48, %v751_v49 }
 0x15e   : > { %p1445_p9 = por %p1444_p7, %p1443_p6 }
 0x15f   : > { %v755_v52 = vpack.c.bf16 %v752_v51, %v735_v50 }
 0x160   : > { %p1446_p12 = pnand %p1445_p9, %p1439_p3 }
 0x161   : > { %1238 = vmatmul.mubr.msk.bf16.vlgmr.msra.gmra.mxu1 %vm779_vm12, %v755_v52 }
 0x162   : > { %1253 = vmatprep.mubr.msk.bf16.mxu1 %vm1529_vm1, %v1528_v2  ;;  %1250 = vmatpush3.bf16.msra.mxu1 %v1356_v1 }
 0x163   : > { %1251 = vmatprep.subr.bf16.mxu1 %v1528_v2 }
 0x166   : > { %1252 = vmatpush3.bf16.msra.mxu1 %v1357_v3 }
 0x221   : > { %v817_v56 = vpop.f32.mrf.mxu1 }
 0x222   : > { %v818_v58 = vadd.f32 %v1198_v55, %v817_v56 }
 0x223   : > { %v1239_v57 = vpop.f32.mrf.mxu1 }
 0x224   : > { %v824_v62 = vmax.f32 %v818_v58, 0.0 }
 0x225   : > { %v820_v59 = vpop.f32.mrf.mxu1 }
 0x226   : > { %v821_v60 = vadd.f32 %v1198_v55, %v820_v59 }
 0x227   : > { %v1240_v61 = vpop.f32.mrf.mxu1 }
 0x228   : > { %v825_v63 = vmax.f32 %v821_v60, 0.0 }
 0x22a   : > { %v826_v0 = vpack.c.bf16 %v825_v63, %v824_v62 }
 0x22c   : > { %1246 = vmatmul.mubr.msk.bf16.vlgmr.msra.gmra.mxu0 %vm779_vm12, %v826_v0 }
 0x2ec   : > { %v887_v5 = vpop.f32.mrf.mxu0 }
 0x2ed   : > { %v888_v7 = vadd.f32 %v1202_v4, %v887_v5 }
 0x2ee   : > { %v1247_v6 = vpop.f32.mrf.mxu0 }
 0x2ef   : > { %v894_v11 = vmax.f32 %v888_v7, 0.0 }
 0x2f0   : > { %v890_v8 = vpop.f32.mrf.mxu0 }
 0x2f1   : > { %v891_v9 = vadd.f32 %v1202_v4, %v890_v8 }
 0x2f2   : > { %v1248_v10 = vpop.f32.mrf.mxu0 }
 0x2f3   : > { %v895_v12 = vmax.f32 %v891_v9, 0.0 }
 0x2f5   : > { %v896_v2 = vpack.c.bf16 %v895_v12, %v894_v11 }
 0x2f7   : > { %1254 = vmatmul.mubr.msk.bf16.vlgmr.msra.gmra.mxu1 %vm779_vm12, %v896_v2 }
 0x2f8   : > { %1449 = shalt.err (!%p1446_p12)
}
 0x2f9   : > { %s1450_s11 = scalar_lea.hbm %s1796_s19, 256  ;;  %s1454_s22 = scalar_lea.hbm %s1880_s10, 512 }
 0x2fa   : > { %p1451_p1 = scmp.ne.s32.totalorder %s1796_s19, %s1450_s11  ;;  %p1455_p5 = scmp.lt.s32.totalorder %s1796_s19, %s1880_s10 }
 0x2fb   : > { %p1456_p10 = scmp.lt.s32.totalorder %s1454_s22, %s1450_s11 }
 0x2fc   : > { %p1452_p8 = pnand %p1451_p1, %p1629_p4 }
 0x2fd   : > { %p1457_p11 = por %p1456_p10, %p1455_p5 }
 0x2fe   : > { %p1453_p2 = pneg %p1452_p8 }
 0x300   : > { %p1458_p13 = pnand %p1457_p11, %p1453_p2 }
 0x302   : > { %1461 = shalt.err (!%p1458_p13)
}
 0x303   : > { %s1532_s29 = smov 32   ;;  %s1533_s28 = smov 2   ;;  %v1206_v13 = vld [vmem:[%s1878_s8] ss:$0 sm:$0xff]  ;;  %vm1008_vm13 = vcmask 25600  }
 0x304   : > { %1269 = dma.vmem_to_hbm [thread:$0]  (%p1629_p4), %s1798_s27, 256, %s1796_s19, %s1802_s30, %s1532_s29, %s1532_s29, %s1533_s28  }
 0x3b7   : > { %v957_v14 = vpop.f32.mrf.mxu1 }
 0x3b8   : > { %v958_v15 = vadd.f32 %v1206_v13, %v957_v14 }
 0x3b9   : > { %v1255_v16 = vpop.f32.mrf.mxu1 }
 0x3ba   : > { %v966_v17 = vcombine.high %v958_v15, %v958_v15  ;;  %v973_v18 = vrot.slane %v958_v15, %v1718_v28 }
 0x3bb   : > { %v960_v19 = vpop.f32.mrf.mxu1 }
 0x3bc   : > { %v980_v20 = vrot.slane %v966_v17, %v1718_v28  ;;  %v981_v21 = vcombine.high %v973_v18, %v973_v18  ;;  %1009 = vst.msk [vmem:[%s1706_s21] sm:$0x3] %vm1008_vm13, %v973_v18  ;;  %v961_v22 = vadd.f32 %v1206_v13, %v960_v19 }
 0x3bd   : > { %v1256_v23 = vpop.f32.mrf.mxu1 }
 0x3be   : > { %v982_v24 = vcombine.high %v980_v20, %v980_v20  ;;  %1010 = vst.msk [vmem:[%s1706_s21 + $0x2] sm:$0x3] %vm1008_vm13, %v981_v21  ;;  %1011 = vst.msk [vmem:[%s1706_s21 + $0x4] sm:$0x3] %vm1008_vm13, %v980_v20  ;;  %v983_v25 = vcombine.high %v961_v22, %v961_v22  ;;  %v990_v26 = vrot.slane %v961_v22, %v1718_v28 }
 0x3c0   : > { %1012 = vst.msk [vmem:[%s1706_s21 + $0x6] sm:$0x3] %vm1008_vm13, %v982_v24  ;;  %v997_v27 = vrot.slane %v983_v25, %v1718_v28  ;;  %v998_v29 = vcombine.high %v990_v26, %v990_v26  ;;  %1013 = vst.msk [vmem:[%s1706_s21 + $0x8] sm:$0x3] %vm1008_vm13, %v990_v26 }
 0x3c2   : > { %v999_v30 = vcombine.high %v997_v27, %v997_v27  ;;  %1014 = vst.msk [vmem:[%s1706_s21 + $0xa] sm:$0x3] %vm1008_vm13, %v998_v29  ;;  %1015 = vst.msk [vmem:[%s1706_s21 + $0xc] sm:$0x3] %vm1008_vm13, %v997_v27 }
 0x3c4   : > { %1016 = vst.msk [vmem:[%s1706_s21 + $0xe] sm:$0x3] %vm1008_vm13, %v999_v30 }
 0x3c5 PF: > { %p1291_p4 = scmp.ge.s32.totalorder %s1520_s18, 2  ;;  %s1070_s23 = sand.u32 1, %s1500_s13  }
 0x3c6   : > { %p1890_p0 = scmp.ne.s32.totalorder %s1886_s25, 0  ;;  %s1071_s27 = scalar_lea.sflag [#allocation6], %s1070_s23 }
 0x3c8   : > { %p1282_p3 = pnand %p1291_p4, %p1890_p0 }
 0x3ca   : > { %p1283_p6 = pneg %p1282_p3 }
 0x3cc   : > { %1495 = dma.done.wait (%p1283_p6), %s1071_s27, 256  }
 0x3cd   : > { %1497 = vsyncadd (%p1283_p6), %s1071_s27, 4294967040  ;;  %s26_s18 = sadd.s32 1, %s1520_s18   ;;  %s1891_s16 = sld [smem:[#allocation14_spill]] }
 0x3ce   : > { %p23_p7 = scmp.ge.s32.totalorder %s26_s18, 4   ;;  %s1892_s17 = sld [smem:[#allocation15_spill]] }
 0x3cf   : > { %s1893_s13 = smov %s1504_s14  ;;  %s1894_s14 = smov %s1508_s15 }
 0x3d0   : > { %s1895_s15 = smov %s1642_s26  ;;  %25 = sbr.rel (!%p23_p7) target bundleno = 6 (0x6), region = 127 }
 0x3d5   :  { %1076 = vsyncpa [#allocation5], 1 }
 0x3d6   :  { %1078 = vsyncpa [#allocation5 + $0x1], 1 }
 0x3d7   :  { %1079 = vsyncpa [#allocation8], 1 }
 0x3d8   :  { %1080 = vsyncpa [#allocation6], 1 }
 0x3d9   :  { %1082 = vsyncpa [#allocation6 + $0x1], 1 }

</bundles_post_ra>
